<compile_context>
chip_gen: v6e
topology: v6e:2x2x1
jax: 0.10.0
libtpu: 0.0.40
codegen_flags: <defaults>
</compile_context>

<pallas_src>
import functools

import jax
import jax.numpy as jnp
from jax.experimental import pallas as pl
from jax.experimental.pallas import tpu as pltpu


def _linear_kernel(xt_ref, w_ref, b_ref, o_ref):
    # xt_ref: (D, TB) f32  -- batch on the lane axis (lane-dense loads)
    # w_ref : (D, 1)  f32  -- weight column, resident across all grid steps
    # b_ref : (1,)    f32  -- bias scalar in SMEM
    # o_ref : (1, TB) f32  -- lane-dense output slab
    # VPU broadcast-multiply + sublane reduce; no MXU, no transpose in-kernel.
    y = jnp.sum(xt_ref[...] * w_ref[...], axis=0, keepdims=True)  # (1, TB)
    o_ref[...] = y + b_ref[0]


def _pick_tb(d):
    # Keep the double-buffered x tile (2 * D * TB * 4 B) to a few MiB so it
    # fits comfortably under the default scoped-VMEM limits on every
    # generation (16 MiB v5e, 32 MiB v6e/v7x, 64 MiB physical on v7x).
    budget_bytes = 4 * 1024 * 1024
    tb = budget_bytes // (2 * d * 4)
    tb = (tb // 128) * 128
    return int(max(128, min(1024, tb)))


@functools.partial(jax.jit, static_argnames=("block_b",))
def test_samnet_forward(x, weight, bias, *, block_b=None):
    """Pallas equivalent of TestSAMNet.forward.

    x:      (B, n_dim)  float32
    weight: (1, n_dim)  float32   (PyTorch nn.Linear weight layout)
    bias:   (1,)        float32
    returns (B, 1) float32
    """
    B, D = x.shape
    tb = block_b if block_b is not None else _pick_tb(D)
    num_tiles = pl.cdiv(B, tb)
    b_pad = num_tiles * tb

    # Lane-dense layout: batch on the lane axis (cheap for small D); pad the
    # batch so every tile is full, then slice the padding off afterwards.
    xt = jnp.pad(x, ((0, b_pad - B), (0, 0))).T            # (D, B_pad)
    w_col = weight.reshape(D, 1)                           # (D, 1)
    b1 = bias.reshape(1).astype(jnp.float32)               # (1,) -> SMEM

    out = pl.pallas_call(
        _linear_kernel,
        out_shape=jax.ShapeDtypeStruct((1, b_pad), jnp.float32),
        grid_spec=pl.GridSpec(
            grid=(num_tiles,),
            in_specs=[
                pl.BlockSpec((D, tb), lambda i: (0, i)),      # streamed x tile
                pl.BlockSpec((D, 1), lambda i: (0, 0)),       # resident weight
                pl.BlockSpec(memory_space=pltpu.MemorySpace.SMEM),  # bias
            ],
            out_specs=pl.BlockSpec((1, tb), lambda i: (0, i)),
        ),
        compiler_params=pltpu.CompilerParams(
            dimension_semantics=("parallel",),   # shard batch tiles across TCs
            vmem_limit_bytes=64 * 1024 * 1024,
        ),
    )(xt, w_col, b1)

    return out[0, :B].reshape(B, 1)


if __name__ == "__main__":
    key = jax.random.PRNGKey(0)
    kx, kw, kb = jax.random.split(key, 3)

    batch, n_dim = 8, 2

    # Deterministic synthetic parameters matching nn.Linear(n_dim, 1) shapes.
    x = jax.random.normal(kx, (batch, n_dim), dtype=jnp.float32)
    weight = jax.random.normal(kw, (1, n_dim), dtype=jnp.float32) * 0.5
    bias = jax.random.normal(kb, (1,), dtype=jnp.float32) * 0.1

    y = test_samnet_forward(x, weight, bias)
    y = jax.block_until_ready(y)

    # Reference check in plain JAX.
    y_ref = x @ weight.T + bias
    assert y.shape == (batch, 1)
    assert jnp.allclose(y, y_ref, atol=1e-5), (y, y_ref)

    print("KERNEL_OK")
</pallas_src>

<mosaic_0001>
module attributes {stable_mosaic.version = 11 : i64} {
  func.func @_linear_kernel(%arg0: i32, %arg1: memref<2x1024xf32, #tpu.memory_space<vmem>>, %arg2: memref<2x1xf32, #tpu.memory_space<vmem>>, %arg3: memref<1xf32, #tpu.memory_space<smem>>, %arg4: memref<1x1024xf32, #tpu.memory_space<vmem>>) attributes {dimension_semantics = [#tpu.dimension_semantics<parallel>], iteration_bounds = array<i64: 1>, scalar_prefetch = 0 : i64, scratch_operands = 0 : i64, tpu.core_type = #tpu.core_type<tc>, window_params = [{transform_indices = @transform_0, window_bounds = array<i64: 2, 1024>}, {pipeline_mode = #tpu.pipeline_mode<synchronous>, transform_indices = @transform_1, window_bounds = array<i64: 2, 1>}, {transform_indices = @transform_2, window_bounds = array<i64: 1>}, {transform_indices = @transform_3, window_bounds = array<i64: 1, 1024>}]} {
    %c0 = arith.constant 0 : index
    %c0_0 = arith.constant 0 : index
    %0 = vector.load %arg1[%c0, %c0_0] : memref<2x1024xf32, #tpu.memory_space<vmem>>, vector<2x1024xf32>
    %c0_1 = arith.constant 0 : index
    %c0_2 = arith.constant 0 : index
    %1 = vector.load %arg2[%c0_1, %c0_2] : memref<2x1xf32, #tpu.memory_space<vmem>>, vector<2x1xf32>
    %2 = vector.broadcast %1 : vector<2x1xf32> to vector<2x1024xf32>
    %3 = arith.mulf %0, %2 : vector<2x1024xf32>
    %cst = arith.constant dense<0.000000e+00> : vector<1024xf32>
    %4 = vector.multi_reduction <add>, %3, %cst [0] : vector<2x1024xf32> to vector<1024xf32>
    %5 = vector.shape_cast %4 : vector<1024xf32> to vector<1x1024xf32>
    %c0_3 = arith.constant 0 : index
    %6 = memref.load %arg3[%c0_3] : memref<1xf32, #tpu.memory_space<smem>>
    %7 = vector.broadcast %6 : f32 to vector<1x1024xf32>
    %8 = arith.addf %5, %7 : vector<1x1024xf32>
    %c0_4 = arith.constant 0 : index
    %c0_5 = arith.constant 0 : index
    %9 = vector.load %arg4[%c0_4, %c0_5] : memref<1x1024xf32, #tpu.memory_space<vmem>>, vector<1x1024xf32>
    tpu.vector_store %arg4[%c0_4, %c0_5], %8 {strides = array<i32>} : memref<1x1024xf32, #tpu.memory_space<vmem>>, vector<1x1024xf32>,
    return
  }
  func.func @transform_0(%arg0: i32) -> (i32, i32) {
    %c0_i32 = arith.constant 0 : i32
    %c0_i32_0 = arith.constant 0 : i32
    return %c0_i32, %arg0 : i32, i32
  }
  func.func @transform_1(%arg0: i32) -> (i32, i32) {
    %c0_i32 = arith.constant 0 : i32
    %c0_i32_0 = arith.constant 0 : i32
    %c0_i32_1 = arith.constant 0 : i32
    return %c0_i32, %c0_i32_0 : i32, i32
  }
  func.func @transform_2(%arg0: i32) -> i32 {
    %c0_i32 = arith.constant 0 : i32
    %c0_i32_0 = arith.constant 0 : i32
    return %c0_i32 : i32
  }
  func.func @transform_3(%arg0: i32) -> (i32, i32) {
    %c0_i32 = arith.constant 0 : i32
    %c0_i32_0 = arith.constant 0 : i32
    return %c0_i32, %arg0 : i32, i32
  }
}

</mosaic_0001>

<bundles_post_ra>
// kernel: test_samnet_forward.1
= control target key start
LH: loop header
LB: loop body
LE: loop exit
PB: predicated region body
PF: predicated region fallthrough
CT: control target
= control target key end

     0   :  { %v211_v0 = vmov 0   ;;  %v212_v2 = vmov 269488144   ;;  %v25_v4 = vlaneseq  ;;  %v213_v7 = vmov 1983009808   ;;  %s276_s1 = inlined_call_operand.vmem [shape: f32[2,1], index: 1, kind: input, shape index: {}]   ;;  %s277_s0 = inlined_call_operand.vmem [shape: f32[2,1024], index: 0, kind: input, shape index: {}]   ;;  %s278_s2 = inlined_call_operand.<no memory space> [shape: f32[1], index: 2, kind: input, shape index: {}]   ;;  %s279_s3 = inlined_call_operand.vmem [shape: f32[1,1024], index: 3, kind: output, shape index: {}]  }
   0x1   :  { %210 = vset.pattern.permute.xlu0 %v211_v0  ;;  %v17_v1 = vld [vmem:[%s276_s1] sm:$0x3]  ;;  %v23_v3 = vunpack.c.l.s4 %v212_v2  ;;  %v36_v8 = vunpack.c.l.s4 %v213_v7  ;;  %v16_v13 = vld [vmem:[%s277_s0 + $0x8] sm:$0xff]  ;;  %vm76_vm0 = vcmask 1041408   ;;  %v214_v18 = vmov 1966171168  }
   0x2   :  { %20 = vperm.xlu0 %210, %v17_v1   ;;  %v238_v6 = vshrl.u32 %v25_v4, 7  ;;  %v15_v12 = vld [vmem:[%s277_s0] sm:$0xff]  ;;  %v248_v19 = vunpack.c.l.s4 %v214_v18  ;;  %v253_v28 = vstv %s278_s2 }
   0x3   :  { %v24_v5 = vunpack.c.0.s8 %v23_v3  ;;  %v37_v10 = vunpack.c.0.s8 %v36_v8 }
   0x4   :  { %v157_v29 = vunpack.c.0.s8 %v248_v19 }
   0x5   :  { %v27_v9 = vsub.s32 %v24_v5, %v238_v6  ;;  %v40_v14 = vsub.s32 %v37_v10, %v238_v6 }
  0x7d   :  { %v21_v11 = vpop.permute.xlu0 %20 }
  0x7e   :  { %v28_v15 = vrot.slane %v21_v11, %v27_v9 }
  0x80   :  { %v30_v16 = vmul.f32 %v28_v15, %v15_v12  ;;  %v31_v17 = vmul.f32 %v28_v15, %v16_v13 }
  0x82   :  { %v34_v20 = vcombine.high %v30_v16, %v30_v16  ;;  %v41_v21 = vrot.slane %v30_v16, %v40_v14  ;;  %v51_v22 = vcombine.high %v31_v17, %v31_v17  ;;  %v58_v23 = vrot.slane %v31_v17, %v40_v14 }
  0x84   :  { %v48_v24 = vrot.slane %v34_v20, %v40_v14  ;;  %v49_v25 = vcombine.high %v41_v21, %v41_v21  ;;  %v65_v26 = vrot.slane %v51_v22, %v40_v14  ;;  %v66_v27 = vcombine.high %v58_v23, %v58_v23 }
  0x85   :  { %v77_v30 = vsel %vm76_vm0, %v41_v21, 0.0  ;;  %v105_v31 = vsel %vm76_vm0, %v58_v23, 0.0 }
  0x86   :  { %v50_v32 = vcombine.high %v48_v24, %v48_v24  ;;  %v67_v33 = vcombine.high %v65_v26, %v65_v26  ;;  %v78_v34 = vrot.slane %v77_v30, 4  ;;  %v84_v35 = vsel %vm76_vm0, %v49_v25, 0.0 }
  0x87   :  { %v85_v36 = vrot.slane %v84_v35, 4  ;;  %v91_v37 = vsel %vm76_vm0, %v48_v24, 0.0  ;;  %v106_v38 = vrot.slane %v105_v31, 4  ;;  %v112_v39 = vsel %vm76_vm0, %v66_v27, 0.0 }
  0x88   :  { %v79_v40 = vadd.f32 %v78_v34, %v77_v30  ;;  %v92_v41 = vrot.slane %v91_v37, 4  ;;  %v98_v42 = vsel %vm76_vm0, %v50_v32, 0.0  ;;  %v113_v43 = vrot.slane %v112_v39, 4 }
  0x89   :  { %v86_v44 = vadd.f32 %v85_v36, %v84_v35  ;;  %v99_v45 = vrot.slane %v98_v42, 4  ;;  %v107_v46 = vadd.f32 %v106_v38, %v105_v31  ;;  %v119_v47 = vsel %vm76_vm0, %v65_v26, 0.0 }
  0x8a   :  { %v80_v48 = vrot.slane %v79_v40, 2  ;;  %v93_v49 = vadd.f32 %v92_v41, %v91_v37  ;;  %v114_v50 = vadd.f32 %v113_v43, %v112_v39  ;;  %v120_v51 = vrot.slane %v119_v47, 4 }
  0x8b   :  { %v87_v52 = vrot.slane %v86_v44, 2  ;;  %v100_v53 = vadd.f32 %v99_v45, %v98_v42  ;;  %v108_v54 = vrot.slane %v107_v46, 2  ;;  %v126_v55 = vsel %vm76_vm0, %v67_v33, 0.0 }
  0x8c   :  { %v81_v56 = vadd.f32 %v80_v48, %v79_v40  ;;  %v94_v57 = vrot.slane %v93_v49, 2  ;;  %v115_v58 = vrot.slane %v114_v50, 2  ;;  %v121_v59 = vadd.f32 %v120_v51, %v119_v47 }
  0x8d   :  { %v88_v60 = vadd.f32 %v87_v52, %v86_v44  ;;  %v101_v61 = vrot.slane %v100_v53, 2  ;;  %v109_v62 = vadd.f32 %v108_v54, %v107_v46  ;;  %v127_v63 = vrot.slane %v126_v55, 4 }
  0x8e   :  { %v82_v0 = vrot.slane %v81_v56, 1  ;;  %v95_v1 = vadd.f32 %v94_v57, %v93_v49  ;;  %v116_v2 = vadd.f32 %v115_v58, %v114_v50  ;;  %v122_v3 = vrot.slane %v121_v59, 2 }
  0x8f   :  { %v89_v4 = vrot.slane %v88_v60, 1  ;;  %v102_v5 = vadd.f32 %v101_v61, %v100_v53  ;;  %v110_v7 = vrot.slane %v109_v62, 1  ;;  %v128_v8 = vadd.f32 %v127_v63, %v126_v55 }
  0x90   :  { %v83_v9 = vadd.f32 %v82_v0, %v81_v56  ;;  %v96_v10 = vrot.slane %v95_v1, 1  ;;  %v117_v11 = vrot.slane %v116_v2, 1  ;;  %v123_v12 = vadd.f32 %v122_v3, %v121_v59 }
  0x91   :  { %v90_v13 = vadd.f32 %v89_v4, %v88_v60  ;;  %v103_v14 = vrot.slane %v102_v5, 1  ;;  %v129_v15 = vrot.slane %v128_v8, 2  ;;  %v111_v17 = vadd.f32 %v110_v7, %v109_v62 }
  0x92   :  { %v97_v16 = vadd.f32 %v96_v10, %v95_v1  ;;  %v118_v18 = vadd.f32 %v117_v11, %v116_v2  ;;  %v124_v19 = vrot.slane %v123_v12, 1  ;;  %v135_v22 = vadd.f32 %v253_v28, %v83_v9 }
  0x93   :  { %v104_v20 = vadd.f32 %v103_v14, %v102_v5  ;;  %v130_v21 = vadd.f32 %v129_v15, %v128_v8  ;;  %v136_v23 = vadd.f32 %v253_v28, %v90_v13  ;;  %v160_v24 = vsub.s32 %v157_v29, %v238_v6 }
  0x94   :  { %v125_v25 = vadd.f32 %v124_v19, %v123_v12  ;;  %v137_v26 = vadd.f32 %v253_v28, %v97_v16  ;;  %v140_v31 = vadd.f32 %v253_v28, %v118_v18  ;;  %v139_v34 = vadd.f32 %v253_v28, %v111_v17 }
  0x95   :  { %v131_v27 = vrot.slane %v130_v21, 1  ;;  %v138_v30 = vadd.f32 %v253_v28, %v104_v20  ;;  %v151_v32 = vcombine.low %v135_v22, %v136_v23 }
  0x96   :  { %v141_v36 = vadd.f32 %v253_v28, %v125_v25  ;;  %v153_v38 = vcombine.low %v139_v34, %v140_v31 }
  0x97   :  { %v132_v33 = vadd.f32 %v131_v27, %v130_v21  ;;  %v152_v35 = vcombine.low %v137_v26, %v138_v30  ;;  %v161_v39 = vrot.slane %v151_v32, %v160_v24 }
  0x98   :  { %v175_v41 = vrot.slane %v153_v38, %v160_v24 }
  0x99   :  { %v142_v37 = vadd.f32 %v253_v28, %v132_v33  ;;  %v168_v6 = vrot.slane %v152_v35, %v160_v24 }
  0x9b   :  { %v154_v29 = vcombine.low %v141_v36, %v142_v37  ;;  %v183_v40 = vcombine.low %v161_v39, %v168_v6 }
  0x9d   :  { %v182_v42 = vrot.slane %v154_v29, %v160_v24  ;;  %v191_v44 = vrot.slane %v183_v40, %v160_v24 }
  0x9f   :  { %v184_v43 = vcombine.low %v175_v41, %v182_v42 }
  0xa1   :  { %v198_v45 = vrot.slane %v184_v43, %v160_v24 }
  0xa3   :  { %v199_v46 = vcombine.low %v191_v44, %v198_v45 }
  0xa5   :  { %201 = vst [vmem:[%s279_s3] sm:$0xff] %v199_v46 }

</bundles_post_ra>
